<compile_context>
chip_gen: v5e
topology: v5e:2x2
jax: 0.10.0
libtpu: 0.0.40
codegen_flags: <defaults>
</compile_context>

<pallas_src>
import jax
import jax.numpy as jnp
from jax.experimental import pallas as pl
from jax.experimental.pallas import tpu as pltpu


def _round_up(x, m):
    return (x + m - 1) // m * m


def _pick_tile_b(B, in_dim):
    """Batch tile heuristic (see header).  Always a multiple of 8 (or == B)."""
    if B <= 512:
        return B                                   # single grid step
    if B <= 8192:
        tile = _round_up((B + 1) // 2, 8)          # >=2 parallel steps (v7x: 2 TCs)
    else:
        tile = 4096                                # big tiles amortize step overhead
    # Keep double-buffered x (f32) + lane-padded out (f32) blocks well under the
    # default scoped-VMEM limit.
    bytes_per_row = 2 * (in_dim * 4) + 2 * (128 * 4)
    cap = max(8, ((24 << 20) // bytes_per_row) // 8 * 8)
    return max(8, min(tile, cap))


def _make_kernel(n_classes, compute_dtype):
    def kernel(x_ref, we_ref, be_ref, w1_ref, b1_ref, a_ref, o_ref):
        # x_ref:  (TB, IN)       f32 batch tile (streamed)
        # we_ref: (IN, EMB_P)    compute-dtype embedding weight (zero-padded cols)
        # be_ref: (1, EMB_P)     f32 embedding bias (zero-padded)
        # w1_ref: (EMB_P, NC_P)  compute-dtype fc1 weight (zero-padded rows/cols)
        # b1_ref: (1, NC_P)      f32 fc1 bias (-1e30 on padded classes)
        # a_ref:  (1, 1)         f32 PReLU slope, SMEM scalar
        # o_ref:  (TB, NC)       f32 log-softmax scores (exact class dim)

        # embedding_net: Linear.  Cast the streamed f32 tile to the MXU dtype here
        # (instead of a wrapper pad/cast pass over x in HBM); accumulate in f32.
        x = x_ref[...].astype(compute_dtype)
        emb = jnp.dot(x, we_ref[...],
                      preferred_element_type=jnp.float32) + be_ref[...]

        # PReLU with a single shared slope (nn.PReLU() default) from SMEM.
        a = a_ref[0, 0]
        h = jnp.where(emb > 0, emb, a * emb)

        # fc1: bf16 x bf16 on the MXU, f32 accumulation, f32 bias with -1e30 pads.
        logits = jnp.dot(h.astype(compute_dtype), w1_ref[...],
                         preferred_element_type=jnp.float32) + b1_ref[...]

        # Numerically stable log_softmax in f32.  Padded classes carry -1e30 bias so
        # they affect neither the max nor the sum (exp underflows to 0).
        m = jnp.max(logits, axis=-1, keepdims=True)
        shifted = logits - m
        lse = jnp.log(jnp.sum(jnp.exp(shifted), axis=-1, keepdims=True))

        # Store only the real classes; the padded lanes never leave the kernel.
        o_ref[...] = (shifted - lse)[:, :n_classes]

    return kernel


def classification_net(x, we, be, prelu_a, w1, b1, *, tile_b=None,
                       compute_dtype=jnp.bfloat16):
    # compute_dtype=jnp.float32 gives strict f32 parity (slower on the MXU).
    B, IN = x.shape
    EMB = we.shape[1]
    NC = w1.shape[1]

    EMB_P = _round_up(EMB, 128)
    NC_P = _round_up(NC, 128)

    if tile_b is None:
        tile_b = _pick_tile_b(B, IN)
    tile_b = min(tile_b, _round_up(B, 8))
    grid = (pl.cdiv(B, tile_b),)

    # Tiny, resident weight slabs: pad feature dims to lane-dense (x128) at trace time.
    #   * zero-padded embedding cols: bias 0, PReLU(0)=0, fc1 rows 0 -> no effect.
    #   * padded classes: -1e30 f32 bias -> exp() == 0 under the softmax.
    we_p = jnp.zeros((IN, EMB_P), compute_dtype).at[:, :EMB].set(
        we.astype(compute_dtype))
    be_p = jnp.zeros((1, EMB_P), jnp.float32).at[0, :EMB].set(
        be.astype(jnp.float32))
    w1_p = jnp.zeros((EMB_P, NC_P), compute_dtype).at[:EMB, :NC].set(
        w1.astype(compute_dtype))
    b1_p = jnp.full((1, NC_P), -1e30, jnp.float32).at[0, :NC].set(
        b1.astype(jnp.float32))
    a2 = jnp.asarray(prelu_a, jnp.float32).reshape(1, 1)

    cost = pl.CostEstimate(
        flops=2 * B * (IN * EMB_P + EMB_P * NC_P),
        transcendentals=B * NC_P,
        bytes_accessed=B * (IN * x.dtype.itemsize + NC * 4)
        + (IN * EMB_P + EMB_P * NC_P) * jnp.dtype(compute_dtype).itemsize,
    )

    out = pl.pallas_call(
        _make_kernel(NC, compute_dtype),
        out_shape=jax.ShapeDtypeStruct((B, NC), jnp.float32),
        grid_spec=pltpu.PrefetchScalarGridSpec(
            num_scalar_prefetch=0,
            grid=grid,
            in_specs=[
                pl.BlockSpec((tile_b, IN), lambda i: (i, 0)),       # x tile (f32, streamed)
                pl.BlockSpec((IN, EMB_P), lambda i: (0, 0)),        # emb weight (resident)
                pl.BlockSpec((1, EMB_P), lambda i: (0, 0)),         # emb bias
                pl.BlockSpec((EMB_P, NC_P), lambda i: (0, 0)),      # fc1 weight (resident)
                pl.BlockSpec((1, NC_P), lambda i: (0, 0)),          # fc1 bias (-1e30 pads)
                pl.BlockSpec(memory_space=pltpu.MemorySpace.SMEM),  # PReLU slope scalar
            ],
            out_specs=pl.BlockSpec((tile_b, NC), lambda i: (i, 0)),  # exact class dim
        ),
        compiler_params=pltpu.CompilerParams(
            dimension_semantics=("parallel",),
        ),
        cost_estimate=cost,
    )(x, we_p, be_p, w1_p, b1_p, a2)

    return out


def reference(x, we, be, prelu_a, w1, b1, compute_dtype=jnp.bfloat16):
    # Mirrors the kernel's MXU quantization (bf16 operands, f32 accumulation/epilogue).
    f32 = jnp.float32
    xq = x.astype(compute_dtype).astype(f32)
    weq = we.astype(compute_dtype).astype(f32)
    emb = xq @ weq + be
    h = jnp.where(emb > 0, emb, prelu_a * emb)
    hq = h.astype(compute_dtype).astype(f32)
    w1q = w1.astype(compute_dtype).astype(f32)
    logits = hq @ w1q + b1
    return jax.nn.log_softmax(logits, axis=-1)


if __name__ == "__main__":
    # x: [B, IN] -> embedding_net (Linear) -> [B, EMB] -> PReLU -> fc1 -> log_softmax
    B, IN, EMB, NC = 16, 64, 32, 10

    key = jax.random.PRNGKey(0)
    k_x, k_we, k_be, k_w1, k_b1, k_x2 = jax.random.split(key, 6)

    x = jax.random.normal(k_x, (B, IN), dtype=jnp.float32)

    # embedding_net params (Linear(IN, EMB)); stored already transposed for x @ W.
    we = jax.random.normal(k_we, (IN, EMB), dtype=jnp.float32) * (1.0 / jnp.sqrt(IN))
    be = jax.random.normal(k_be, (EMB,), dtype=jnp.float32) * 0.1

    # nn.PReLU() default init: single shared parameter = 0.25
    prelu_a = jnp.array(0.25, dtype=jnp.float32)

    # fc1: nn.Linear(EMB, NC) — PyTorch stores (NC, EMB); we pass the transpose (EMB, NC).
    w1 = jax.random.normal(k_w1, (EMB, NC), dtype=jnp.float32) * (1.0 / jnp.sqrt(EMB))
    b1 = jax.random.normal(k_b1, (NC,), dtype=jnp.float32) * 0.1

    # Small batch: single-step grid.
    out = jax.block_until_ready(classification_net(x, we, be, prelu_a, w1, b1))
    ref = reference(x, we, be, prelu_a, w1, b1)
    assert out.shape == (B, NC)
    assert bool(jnp.all(jnp.isfinite(out))), "non-finite output"
    assert jnp.allclose(out, ref, atol=2e-3, rtol=2e-3), "mismatch vs reference (small B)"

    # Mid batch: exercises the >=2-step 'parallel' grid path (512-row tiles, 2 steps).
    B2 = 1024
    x2 = jax.random.normal(k_x2, (B2, IN), dtype=jnp.float32)
    out2 = jax.block_until_ready(classification_net(x2, we, be, prelu_a, w1, b1))
    ref2 = reference(x2, we, be, prelu_a, w1, b1)
    assert out2.shape == (B2, NC)
    assert bool(jnp.all(jnp.isfinite(out2))), "non-finite output (B=1024)"
    assert jnp.allclose(out2, ref2, atol=2e-3, rtol=2e-3), "mismatch vs reference (B=1024)"

    print("KERNEL_OK")
</pallas_src>

<mosaic_0001>
module attributes {stable_mosaic.version = 11 : i64} {
  func.func @kernel(%arg0: i32, %arg1: memref<16x64xf32, #tpu.memory_space<vmem>>, %arg2: memref<64x128xbf16, #tpu.memory_space<vmem>>, %arg3: memref<1x128xf32, #tpu.memory_space<vmem>>, %arg4: memref<128x128xbf16, #tpu.memory_space<vmem>>, %arg5: memref<1x128xf32, #tpu.memory_space<vmem>>, %arg6: memref<1x1xf32, #tpu.memory_space<smem>>, %arg7: memref<16x10xf32, #tpu.memory_space<vmem>>) attributes {dimension_semantics = [#tpu.dimension_semantics<parallel>], iteration_bounds = array<i64: 1>, scalar_prefetch = 0 : i64, scratch_operands = 0 : i64, tpu.core_type = #tpu.core_type<tc>, window_params = [{transform_indices = @transform_0, window_bounds = array<i64: 16, 64>}, {pipeline_mode = #tpu.pipeline_mode<synchronous>, transform_indices = @transform_1, window_bounds = array<i64: 64, 128>}, {pipeline_mode = #tpu.pipeline_mode<synchronous>, transform_indices = @transform_2, window_bounds = array<i64: 1, 128>}, {pipeline_mode = #tpu.pipeline_mode<synchronous>, transform_indices = @transform_3, window_bounds = array<i64: 128, 128>}, {pipeline_mode = #tpu.pipeline_mode<synchronous>, transform_indices = @transform_4, window_bounds = array<i64: 1, 128>}, {transform_indices = @transform_5, window_bounds = array<i64: 1, 1>}, {transform_indices = @transform_6, window_bounds = array<i64: 16, 10>}]} {
    %c0 = arith.constant 0 : index
    %c0_0 = arith.constant 0 : index
    %0 = vector.load %arg1[%c0, %c0_0] : memref<16x64xf32, #tpu.memory_space<vmem>>, vector<16x64xf32>
    %1 = arith.truncf %0 : vector<16x64xf32> to vector<16x64xbf16>
    %c0_1 = arith.constant 0 : index
    %c0_2 = arith.constant 0 : index
    %2 = vector.load %arg2[%c0_1, %c0_2] : memref<64x128xbf16, #tpu.memory_space<vmem>>, vector<64x128xbf16>
    %cst = arith.constant dense<0.000000e+00> : vector<16x128xf32>
    %3 = tpu.matmul %1, %2, %cst {dimension_numbers = #tpu.dot_dimension_numbers<[1], [0], [0], [1], [0, 0, 1, 1], [], []>} : vector<16x64xbf16>, vector<64x128xbf16>, vector<16x128xf32> -> vector<16x128xf32>
    %c0_3 = arith.constant 0 : index
    %c0_4 = arith.constant 0 : index
    %4 = vector.load %arg3[%c0_3, %c0_4] : memref<1x128xf32, #tpu.memory_space<vmem>>, vector<1x128xf32>
    %5 = vector.broadcast %4 : vector<1x128xf32> to vector<16x128xf32>
    %6 = arith.addf %3, %5 : vector<16x128xf32>
    %c0_5 = arith.constant 0 : index
    %c0_6 = arith.constant 0 : index
    %7 = memref.load %arg6[%c0_5, %c0_6] : memref<1x1xf32, #tpu.memory_space<smem>>
    %cst_7 = arith.constant 0.000000e+00 : f32
    %8 = vector.broadcast %cst_7 : f32 to vector<16x128xf32>
    %9 = arith.cmpf ogt, %6, %8 : vector<16x128xf32>
    %10 = vector.broadcast %7 : f32 to vector<16x128xf32>
    %11 = arith.mulf %10, %6 : vector<16x128xf32>
    %12 = arith.select %9, %6, %11 : vector<16x128xi1>, vector<16x128xf32>
    %13 = arith.truncf %12 : vector<16x128xf32> to vector<16x128xbf16>
    %c0_8 = arith.constant 0 : index
    %c0_9 = arith.constant 0 : index
    %14 = vector.load %arg4[%c0_8, %c0_9] : memref<128x128xbf16, #tpu.memory_space<vmem>>, vector<128x128xbf16>
    %cst_10 = arith.constant dense<0.000000e+00> : vector<16x128xf32>
    %15 = tpu.matmul %13, %14, %cst_10 {dimension_numbers = #tpu.dot_dimension_numbers<[1], [0], [0], [1], [0, 0, 1, 1], [], []>} : vector<16x128xbf16>, vector<128x128xbf16>, vector<16x128xf32> -> vector<16x128xf32>
    %c0_11 = arith.constant 0 : index
    %c0_12 = arith.constant 0 : index
    %16 = vector.load %arg5[%c0_11, %c0_12] : memref<1x128xf32, #tpu.memory_space<vmem>>, vector<1x128xf32>
    %17 = vector.broadcast %16 : vector<1x128xf32> to vector<16x128xf32>
    %18 = arith.addf %15, %17 : vector<16x128xf32>
    %cst_13 = arith.constant dense<0xFF800000> : vector<16xf32>
    %19 = vector.multi_reduction <maximumf>, %18, %cst_13 [1] : vector<16x128xf32> to vector<16xf32>
    %20 = vector.shape_cast %19 : vector<16xf32> to vector<16x1xf32>
    %21 = vector.broadcast %20 : vector<16x1xf32> to vector<16x128xf32>
    %22 = arith.subf %18, %21 : vector<16x128xf32>
    %23 = math.exp %22 : vector<16x128xf32>
    %cst_14 = arith.constant dense<0.000000e+00> : vector<16xf32>
    %24 = vector.multi_reduction <add>, %23, %cst_14 [1] : vector<16x128xf32> to vector<16xf32>
    %25 = vector.shape_cast %24 : vector<16xf32> to vector<16x1xf32>
    %26 = math.log %25 : vector<16x1xf32>
    %27 = vector.broadcast %26 : vector<16x1xf32> to vector<16x128xf32>
    %28 = arith.subf %22, %27 : vector<16x128xf32>
    %29 = vector.extract_strided_slice %28 {offsets = [0, 0], sizes = [16, 10], strides = [1, 1]} : vector<16x128xf32> to vector<16x10xf32>
    %c0_15 = arith.constant 0 : index
    %c0_16 = arith.constant 0 : index
    %30 = vector.load %arg7[%c0_15, %c0_16] : memref<16x10xf32, #tpu.memory_space<vmem>>, vector<16x10xf32>
    tpu.vector_store %arg7[%c0_15, %c0_16], %29 {strides = array<i32>} : memref<16x10xf32, #tpu.memory_space<vmem>>, vector<16x10xf32>,
    return
  }
  func.func @transform_0(%arg0: i32) -> (i32, i32) {
    %c0_i32 = arith.constant 0 : i32
    %c0_i32_0 = arith.constant 0 : i32
    return %arg0, %c0_i32 : i32, i32
  }
  func.func @transform_1(%arg0: i32) -> (i32, i32) {
    %c0_i32 = arith.constant 0 : i32
    %c0_i32_0 = arith.constant 0 : i32
    %c0_i32_1 = arith.constant 0 : i32
    return %c0_i32, %c0_i32_0 : i32, i32
  }
  func.func @transform_2(%arg0: i32) -> (i32, i32) {
    %c0_i32 = arith.constant 0 : i32
    %c0_i32_0 = arith.constant 0 : i32
    %c0_i32_1 = arith.constant 0 : i32
    return %c0_i32, %c0_i32_0 : i32, i32
  }
  func.func @transform_3(%arg0: i32) -> (i32, i32) {
    %c0_i32 = arith.constant 0 : i32
    %c0_i32_0 = arith.constant 0 : i32
    %c0_i32_1 = arith.constant 0 : i32
    return %c0_i32, %c0_i32_0 : i32, i32
  }
  func.func @transform_4(%arg0: i32) -> (i32, i32) {
    %c0_i32 = arith.constant 0 : i32
    %c0_i32_0 = arith.constant 0 : i32
    %c0_i32_1 = arith.constant 0 : i32
    return %c0_i32, %c0_i32_0 : i32, i32
  }
  func.func @transform_5(%arg0: i32) -> (i32, i32) {
    %c0_i32 = arith.constant 0 : i32
    %c0_i32_0 = arith.constant 0 : i32
    %c0_i32_1 = arith.constant 0 : i32
    return %c0_i32, %c0_i32_0 : i32, i32
  }
  func.func @transform_6(%arg0: i32) -> (i32, i32) {
    %c0_i32 = arith.constant 0 : i32
    %c0_i32_0 = arith.constant 0 : i32
    return %arg0, %c0_i32 : i32, i32
  }
}

</mosaic_0001>

<bundles_post_ra>
// kernel: tpu_custom_call.1
= control target key start
LH: loop header
LB: loop body
LE: loop exit
PB: predicated region body
PF: predicated region fallthrough
CT: control target
= control target key end

     0   :  { %12 = vsyncpa [#allocation4], 0  ;;  %s515_s0 = inlined_call_operand.hbm [shape: f32[16,64], index: 0, kind: input, shape index: {}]   ;;  %s516_s1 = inlined_call_operand.hbm [shape: bf16[64,128], index: 1, kind: input, shape index: {}]   ;;  %s517_s2 = inlined_call_operand.vmem [shape: f32[1,128], index: 2, kind: input, shape index: {}]   ;;  %s518_s3 = inlined_call_operand.hbm [shape: bf16[128,128], index: 3, kind: input, shape index: {}]   ;;  %s519_s4 = inlined_call_operand.vmem [shape: f32[1,128], index: 4, kind: input, shape index: {}]   ;;  %s520_s5 = inlined_call_operand.<no memory space> [shape: f32[1,1], index: 5, kind: input, shape index: {}]   ;;  %s521_s6 = inlined_call_operand.hbm [shape: f32[16,10], index: 6, kind: output, shape index: {}]  }
   0x1   :  { %13 = vsyncpa [#allocation7], 0  ;;  %s32_s23 = sshll.u32 %s516_s1, 4  ;;  %s33_s23 = int_to_ptr.hbm [resolvable:$true] %s32_s23 }
   0x2   :  { %14 = vsyncpa [#allocation5], 0  ;;  %s445_s24 = smov [#allocation6]   ;;  %s19_s28 = sshll.u32 %s515_s0, 4  ;;  %s20_s28 = int_to_ptr.hbm [resolvable:$true] %s19_s28 }
   0x3   :  { %s34_s25 = sshll.u32 %s445_s24, 4  ;;  %s446_s29 = smov 64   ;;  %s35_s25 = int_to_ptr.vmem [resolvable:$true] %s34_s25 }
   0x4   :  { %s447_s30 = smov 4   ;;  %s448_s7 = smov [#allocation3]  }
   0x5   :  { %40 = dma.hbm_to_vmem [thread:$0]  %s33_s23, 512, %s35_s25, [#allocation7], %s446_s29, %s446_s29, %s447_s30  }
   0x6   :  { %s21_s8 = sshll.u32 %s448_s7, 4  ;;  %s449_s9 = smov 128   ;;  %s22_s8 = int_to_ptr.vmem [resolvable:$true] %s21_s8 }
   0x7   :  { %s450_s10 = smov 8   ;;  %s47_s12 = sshll.u32 %s518_s3, 4  ;;  %s48_s12 = int_to_ptr.hbm [resolvable:$true] %s47_s12 }
   0x8   :  { %27 = dma.hbm_to_vmem [thread:$0]  %s20_s28, 256, %s22_s8, [#allocation4], %s449_s9, %s449_s9, %s450_s10  }
   0x9   :  { %s451_s13 = smov [#allocation8]  }
   0xa   :  { %s49_s0 = sshll.u32 %s451_s13, 4  ;;  %s50_s0 = int_to_ptr.vmem [resolvable:$true] %s49_s0 }
   0xb   :  { %55 = dma.hbm_to_vmem [thread:$0]  %s48_s12, 1024, %s50_s0, [#allocation7], %s446_s29, %s446_s29, %s447_s30  }
   0xc   :  { %439 = dma.done.wait [#allocation4], 256  }
   0xd   :  { %440 = vsyncadd [#allocation4], 4294967040 }
   0xe   :  { %441 = dma.done.wait [#allocation7], 1536  }
   0xf   :  { %442 = vsyncadd [#allocation7], 4294965760  ;;  %v316_v0 = vld [vmem:[#allocation6 + $0x18] sm:$0xff]  ;;  %v315_v1 = vld [vmem:[#allocation6 + $0x10] sm:$0xff]  ;;  %vm112_vm0 = vcmask 523264   ;;  %v133_v18 = vstv %s520_s5  ;;  %vm241_vm3 = vcmask 80896  }
  0x10   :  { %120 = vmatpush.bf16.msra.mxu0 %v316_v0  ;;  %v324_v2 = vld [vmem:[#allocation8 + $0x38] sm:$0xff]  ;;  %v323_v3 = vld [vmem:[#allocation8 + $0x30] sm:$0xff]  ;;  %v314_v4 = vld [vmem:[#allocation6 + $0x8] sm:$0xff]  ;;  %s250_s20 = sshll.u32 %s521_s6, 4  ;;  %s251_s20 = int_to_ptr.hbm [resolvable:$true] %s250_s20 }
  0x11   :  { %207 = vmatpush.bf16.msra.mxu1 %v324_v2  ;;  %v322_v5 = vld [vmem:[#allocation8 + $0x28] sm:$0xff]  ;;  %v313_v6 = vld [vmem:[#allocation6] sm:$0xff]  ;;  %v73_v7 = vld [vmem:[#allocation3] sm:$0xff] }
  0x12   :  { %v74_v8 = vld [vmem:[#allocation3 + $0x8] sm:$0xff]  ;;  %v321_v9 = vld [vmem:[#allocation8 + $0x20] sm:$0xff]  ;;  %v319_v12 = vld [vmem:[#allocation8 + $0x10] sm:$0xff] }
  0x13   :  { %v75_v10 = vpack.c.bf16 %v74_v8, %v73_v7  ;;  %v320_v11 = vld [vmem:[#allocation8 + $0x18] sm:$0xff]  ;;  %v318_v13 = vld [vmem:[#allocation8 + $0x8] sm:$0xff]  ;;  %v317_v14 = vld [vmem:[#allocation8] sm:$0xff] }
  0x14   :  { %121 = vmatpush.bf16.msra.mxu0 %v315_v1  ;;  %v333_v16 = vld [vmem:[%s517_s2] ss:$0 sm:$0xff]  ;;  %s452_s2 = smov [#allocation9]  }
  0x15   :  { %208 = vmatpush.bf16.msra.mxu1 %v323_v3  ;;  %v334_v26 = vld [vmem:[%s519_s4] ss:$0 sm:$0xff]  ;;  %s248_s4 = sshll.u32 %s452_s2, 4  ;;  %s249_s4 = int_to_ptr.vmem [resolvable:$true] %s248_s4 }
  0x18   :  { %122 = vmatpush.bf16.msra.mxu0 %v314_v4 }
  0x19   :  { %209 = vmatpush.bf16.msra.mxu1 %v322_v5 }
  0x1c   :  { %123 = vmatpush.bf16.msra.mxu0 %v313_v6 }
  0x1d   :  { %210 = vmatpush.bf16.msra.mxu1 %v321_v9 }
  0x1f   :  { %280 = vmatmul.msk.bf16.vlgmr.msra.gmra.mxu0 %vm112_vm0, %v75_v10 }
  0x21   :  { %211 = vmatpush.bf16.msra.mxu1 %v320_v11 }
  0x25   :  { %212 = vmatpush.bf16.msra.mxu1 %v319_v12 }
  0x29   :  { %213 = vmatpush.bf16.msra.mxu1 %v318_v13 }
  0x2d   :  { %214 = vmatpush.bf16.msra.mxu1 %v317_v14 }
  0x9c   :  { %v125_v15 = vpop.f32.mrf.mxu0 }
  0x9d   :  { %v126_v17 = vadd.f32 %v333_v16, %v125_v15 }
  0x9f   :  { %v134_v20 = vmul.f32 %v133_v18, %v126_v17  ;;  %vm131_vm1 = vcmp.gt.f32.partialorder %v126_v17, 0.0 }
  0xa1   :  { %v136_v23 = vsel %vm131_vm1, %v126_v17, %v134_v20 }
  0xa4   :  { %v127_v19 = vpop.f32.mrf.mxu0 }
  0xa5   :  { %v128_v21 = vadd.f32 %v333_v16, %v127_v19 }
  0xa7   :  { %v135_v22 = vmul.f32 %v133_v18, %v128_v21  ;;  %vm132_vm2 = vcmp.gt.f32.partialorder %v128_v21, 0.0 }
  0xa9   :  { %v137_v24 = vsel %vm132_vm2, %v128_v21, %v135_v22 }
  0xaa   :  { %v138_v25 = vpack.c.bf16 %v137_v24, %v136_v23 }
  0xac   :  { %215 = vmatmul.bf16.vlgmr.msra.gmra.mxu1 %v138_v25 }
 0x129   :  { %v216_v27 = vpop.f32.mrf.mxu1 }
 0x12a   :  { %v217_v28 = vadd.f32 %v334_v26, %v216_v27 }
 0x12c   :  { %221 = vmax.xlane.f32.xlu0 %v217_v28 }
 0x131   :  { %v218_v29 = vpop.f32.mrf.mxu1 }
 0x132   :  { %v219_v30 = vadd.f32 %v334_v26, %v218_v29 }
 0x134   :  { %223 = vmax.xlane.f32.xlu0 %v219_v30 }
 0x19f   :  { %v222_v31 = vpop.xlane.xlu0 %221 }
 0x1a0   :  { %v225_v32 = vsub.f32 %v217_v28, %v222_v31 }
 0x1a2   :  { %v227_v33 = vmul.f32 1.442695, %v225_v32 }
 0x1a4   :  { %335 = vpow2.f32 %v227_v33 }
 0x1a7   :  { %v224_v34 = vpop.xlane.xlu0 %223 }
 0x1a8   :  { %v226_v35 = vsub.f32 %v219_v30, %v224_v34 }
 0x1aa   :  { %v336_v36 = vpop.eup %335  ;;  %v229_v37 = vmul.f32 1.442695, %v226_v35 }
 0x1ab   :  { %231 = vadd.xlane.f32.xlu1 %v336_v36 }
 0x1ac   :  { %337 = vpow2.f32 %v229_v37 }
 0x1b2   :  { %v338_v38 = vpop.eup %337 }
 0x1b3   :  { %233 = vadd.xlane.f32.xlu1 %v338_v38 }
 0x21e   :  { %v232_v39 = vpop.xlane.xlu1 %231 }
 0x21f   :  { %339 = vlog2.f32 %v232_v39 }
 0x225   :  { %v340_v40 = vpop.eup %339 }
 0x226   :  { %v236_v41 = vmul.f32 0.6931472, %v340_v40  ;;  %v234_v42 = vpop.xlane.xlu1 %233 }
 0x227   :  { %341 = vlog2.f32 %v234_v42 }
 0x228   :  { %v239_v43 = vsub.f32 %v225_v32, %v236_v41 }
 0x22a   :  { %242 = vst.msk [vmem:[#allocation9] sm:$0xff] %vm241_vm3, %v239_v43 }
 0x22d   :  { %v342_v44 = vpop.eup %341 }
 0x22e   :  { %v238_v45 = vmul.f32 0.6931472, %v342_v44 }
 0x230   :  { %v240_v46 = vsub.f32 %v226_v35, %v238_v45 }
 0x232   :  { %243 = vst.msk [vmem:[#allocation9 + $0x8] sm:$0xff] %vm241_vm3, %v240_v46 }
 0x233   :  { %256 = dma.vmem_to_hbm [thread:$0]  %s249_s4, 256, %s251_s20, [#allocation5], %s449_s9, %s449_s9, %s450_s10  }
 0x234   :  { %443 = dma.done.wait [#allocation5], 256  }
 0x235   :  { %444 = vsyncadd [#allocation5], 4294967040 }
 0x236   :  { %261 = vsyncpa [#allocation4], 1 }
 0x237   :  { %262 = vsyncpa [#allocation7], 1 }
 0x238   :  { %263 = vsyncpa [#allocation5], 1 }

</bundles_post_ra>
